<compile_context>
chip_gen: v6e
topology: v6e:2x2x1
jax: 0.10.0
libtpu: 0.0.40
codegen_flags: <defaults>
</compile_context>

<pallas_src>
import jax
import jax.numpy as jnp
from jax import lax
from jax.experimental import pallas as pl
from jax.experimental.pallas import tpu as pltpu

_LANE = 128


def _solar_nn_kernel(x_ref, w1_ref, b1_ref, w2_ref, b2_ref, w3_ref, b3_ref, o_ref):
    # x  : [TB, D]          (batch on sublanes; in_dim is contracted away below)
    # w1 : [64, D]   b1 : [64, 1]
    # w2 : [32, 64]  b2 : [32, 1]
    # w3 : [32, 1]   b3 : [1, 1]  (SMEM scalar)
    # out: [1, TB]           (batch on lanes -> lane-dense unmasked stores)
    x = x_ref[...]

    # Layer 1: contract over in_dim directly (the "transpose" happens inside the
    # MXU contraction instead of as a separate host-side HBM pass on x).
    h1 = lax.dot_general(
        w1_ref[...], x,
        dimension_numbers=(((1,), (1,)), ((), ())),
        preferred_element_type=jnp.float32,
    ) + b1_ref[...]
    h1 = jnp.maximum(h1, 0.0)                                   # [64, TB]

    h2 = jnp.dot(w2_ref[...], h1, preferred_element_type=jnp.float32) + b2_ref[...]
    h2 = jnp.maximum(h2, 0.0)                                   # [32, TB]

    # Final layer has a single output feature: VPU multiply + sublane (XLU)
    # reduce instead of a 1-wide MXU matmul (kernel is HBM-bound; MXU has slack
    # but this keeps the store path simple).
    out = jnp.sum(w3_ref[...] * h2, axis=0, keepdims=True) + b3_ref[0, 0]  # [1, TB]
    o_ref[...] = out.astype(o_ref.dtype)


def solar_nn_forward(x, params, *, tile_b=32768, use_bf16=False):
    """Fused SolarNN forward. x: [batch, input_dim] float32 -> [batch, 1] float32."""
    orig_batch, in_dim = x.shape

    # Pad tiny batches to one full 128-lane tile so stores are unmasked vst.
    if orig_batch < _LANE:
        x = jnp.pad(x, ((0, _LANE - orig_batch), (0, 0)))
    batch = x.shape[0]

    w1, b1 = params["w1"], params["b1"]                         # [64, D], [64]
    w2, b2 = params["w2"], params["b2"]                         # [32, 64], [32]
    w3, b3 = params["w3"], params["b3"]                         # [1, 32], [1]

    if use_bf16:
        # Halves HBM traffic of the dominant tensor; accumulation stays f32.
        # Changes numerics vs. the f32 reference - gate on tolerance.
        x = x.astype(jnp.bfloat16)
        w1 = w1.astype(jnp.bfloat16)

    # ---- batch tile size -------------------------------------------------
    # Pessimistic VMEM model: the narrow [tb, in_dim] x block is lane-padded to
    # a multiple of 128 in VMEM; the output block [1, tb] is sublane-padded to 8.
    # Budget the double-buffered blocks against ~32 MiB and raise the scoped
    # VMEM limit to 48 MiB (fits v7x's 64 MiB physical; v5e/v6e have 128 MiB).
    x_bpe = jnp.dtype(x.dtype).itemsize
    padded_in = pl.cdiv(in_dim, _LANE) * _LANE
    vmem_budget = 32 * 1024 * 1024
    bytes_per_col = 2 * x_bpe * padded_in + 2 * 4 * 8           # x dbuf + out dbuf
    tb_cap = max(_LANE, (vmem_budget // bytes_per_col) // _LANE * _LANE)

    tb = min(int(tile_b), batch, tb_cap)
    tb = max(_LANE, tb // _LANE * _LANE)
    if batch > 2 * _LANE:
        # Keep at least 2 grid steps so dimension_semantics=("parallel",) can
        # shard the batch across both TensorCores on v7x (one extra ~0.35 us
        # step is negligible on single-TC chips).
        half = pl.cdiv(pl.cdiv(batch, 2), _LANE) * _LANE
        tb = min(tb, max(_LANE, half))

    grid = (pl.cdiv(batch, tb),)

    # x / out blocks walk the batch axis; weights use constant block indices so
    # they are fetched once and stay VMEM-resident across all grid steps.
    x_spec = pl.BlockSpec((tb, in_dim), lambda i: (i, 0))
    w1_spec = pl.BlockSpec((64, in_dim), lambda i: (0, 0))
    b1_spec = pl.BlockSpec((64, 1), lambda i: (0, 0))
    w2_spec = pl.BlockSpec((32, 64), lambda i: (0, 0))
    b2_spec = pl.BlockSpec((32, 1), lambda i: (0, 0))
    w3_spec = pl.BlockSpec((32, 1), lambda i: (0, 0))
    b3_spec = pl.BlockSpec(memory_space=pltpu.MemorySpace.SMEM)  # untiled scalar
    out_spec = pl.BlockSpec((1, tb), lambda i: (0, i))

    flops = 2 * batch * (in_dim * 64 + 64 * 32 + 32)
    bytes_accessed = (
        x_bpe * batch * in_dim + 4 * batch                       # x in, out
        + x_bpe * 64 * in_dim + 4 * 64                           # layer 1 params
        + 4 * (32 * 64 + 32)                                     # layer 2 params
        + 4 * (32 + 1)                                           # layer 3 params
    )

    out_t = pl.pallas_call(
        _solar_nn_kernel,
        out_shape=jax.ShapeDtypeStruct((1, batch), jnp.float32),
        grid=grid,
        in_specs=[x_spec, w1_spec, b1_spec, w2_spec, b2_spec, w3_spec, b3_spec],
        out_specs=out_spec,
        compiler_params=pltpu.CompilerParams(
            dimension_semantics=("parallel",),
            vmem_limit_bytes=48 * 1024 * 1024,
        ),
        cost_estimate=pl.CostEstimate(
            flops=flops, transcendentals=0, bytes_accessed=bytes_accessed
        ),
    )(
        x,
        w1, b1.reshape(64, 1),
        w2, b2.reshape(32, 1),
        w3.reshape(32, 1), b3.reshape(1, 1),
    )
    # [1, batch] -> [orig_batch, 1]  (tiny; just a slice + reshape of B floats)
    return out_t[0, :orig_batch].reshape(orig_batch, 1)


def init_params(key, input_dim):
    # Deterministic init mimicking nn.Linear's uniform(-1/sqrt(fan_in), 1/sqrt(fan_in)).
    ks = jax.random.split(key, 6)

    def lin(kw, kb, fan_in, fan_out):
        bound = 1.0 / jnp.sqrt(jnp.float32(fan_in))
        w = jax.random.uniform(kw, (fan_out, fan_in), jnp.float32, -bound, bound)
        b = jax.random.uniform(kb, (fan_out,), jnp.float32, -bound, bound)
        return w, b

    w1, b1 = lin(ks[0], ks[1], input_dim, 64)
    w2, b2 = lin(ks[2], ks[3], 64, 32)
    w3, b3 = lin(ks[4], ks[5], 32, 1)
    return {"w1": w1, "b1": b1, "w2": w2, "b2": b2, "w3": w3, "b3": b3}


def reference_forward(x, params):
    h1 = jnp.maximum(x @ params["w1"].T + params["b1"], 0.0)
    h2 = jnp.maximum(h1 @ params["w2"].T + params["b2"], 0.0)
    return h2 @ params["w3"].T + params["b3"]


if __name__ == "__main__":
    key = jax.random.PRNGKey(0)
    k_x, k_p = jax.random.split(key)

    batch, input_dim = 256, 16
    x = jax.random.normal(k_x, (batch, input_dim), jnp.float32)
    params = init_params(k_p, input_dim)

    # tile_b=128 -> 2 grid steps so the batch pipeline (and v7x 2-TC sharding)
    # is exercised even at this small demo batch.
    out = jax.block_until_ready(solar_nn_forward(x, params, tile_b=128))
    assert out.shape == (batch, 1)
    assert jnp.allclose(out, reference_forward(x, params), atol=1e-4, rtol=1e-4)

    # Partial final batch tile (batch % tb != 0): masked last-tile store path.
    x2 = jax.random.normal(k_x, (200, input_dim), jnp.float32)
    out2 = jax.block_until_ready(solar_nn_forward(x2, params, tile_b=128))
    assert out2.shape == (200, 1)
    assert jnp.allclose(out2, reference_forward(x2, params), atol=1e-4, rtol=1e-4)

    # Tiny batch (< 128): lane-padded path.
    x3 = jax.random.normal(k_x, (8, input_dim), jnp.float32)
    out3 = jax.block_until_ready(solar_nn_forward(x3, params))
    assert out3.shape == (8, 1)
    assert jnp.allclose(out3, reference_forward(x3, params), atol=1e-4, rtol=1e-4)

    print("KERNEL_OK")
</pallas_src>

<mosaic_0001>
module attributes {stable_mosaic.version = 11 : i64} {
  func.func @_solar_nn_kernel(%arg0: i32, %arg1: memref<128x16xf32, #tpu.memory_space<vmem>>, %arg2: memref<64x16xf32, #tpu.memory_space<vmem>>, %arg3: memref<64x1xf32, #tpu.memory_space<vmem>>, %arg4: memref<32x64xf32, #tpu.memory_space<vmem>>, %arg5: memref<32x1xf32, #tpu.memory_space<vmem>>, %arg6: memref<32x1xf32, #tpu.memory_space<vmem>>, %arg7: memref<1x1xf32, #tpu.memory_space<smem>>, %arg8: memref<1x128xf32, #tpu.memory_space<vmem>>) attributes {dimension_semantics = [#tpu.dimension_semantics<parallel>], iteration_bounds = array<i64: 2>, scalar_prefetch = 0 : i64, scratch_operands = 0 : i64, tpu.core_type = #tpu.core_type<tc>, window_params = [{transform_indices = @transform_0, window_bounds = array<i64: 128, 16>}, {pipeline_mode = #tpu.pipeline_mode<synchronous>, transform_indices = @transform_1, window_bounds = array<i64: 64, 16>}, {pipeline_mode = #tpu.pipeline_mode<synchronous>, transform_indices = @transform_2, window_bounds = array<i64: 64, 1>}, {pipeline_mode = #tpu.pipeline_mode<synchronous>, transform_indices = @transform_3, window_bounds = array<i64: 32, 64>}, {pipeline_mode = #tpu.pipeline_mode<synchronous>, transform_indices = @transform_4, window_bounds = array<i64: 32, 1>}, {pipeline_mode = #tpu.pipeline_mode<synchronous>, transform_indices = @transform_5, window_bounds = array<i64: 32, 1>}, {transform_indices = @transform_6, window_bounds = array<i64: 1, 1>}, {transform_indices = @transform_7, window_bounds = array<i64: 1, 128>}]} {
    %c0 = arith.constant 0 : index
    %c0_0 = arith.constant 0 : index
    %0 = vector.load %arg1[%c0, %c0_0] : memref<128x16xf32, #tpu.memory_space<vmem>>, vector<128x16xf32>
    %c0_1 = arith.constant 0 : index
    %c0_2 = arith.constant 0 : index
    %1 = vector.load %arg2[%c0_1, %c0_2] : memref<64x16xf32, #tpu.memory_space<vmem>>, vector<64x16xf32>
    %cst = arith.constant dense<0.000000e+00> : vector<64x128xf32>
    %2 = tpu.matmul %1, %0, %cst {dimension_numbers = #tpu.dot_dimension_numbers<[1], [1], [0], [0], [0, 0, 1, 0], [], []>} : vector<64x16xf32>, vector<128x16xf32>, vector<64x128xf32> -> vector<64x128xf32>
    %c0_3 = arith.constant 0 : index
    %c0_4 = arith.constant 0 : index
    %3 = vector.load %arg3[%c0_3, %c0_4] : memref<64x1xf32, #tpu.memory_space<vmem>>, vector<64x1xf32>
    %4 = vector.broadcast %3 : vector<64x1xf32> to vector<64x128xf32>
    %5 = arith.addf %2, %4 : vector<64x128xf32>
    %cst_5 = arith.constant 0.000000e+00 : f32
    %6 = vector.broadcast %cst_5 : f32 to vector<64x128xf32>
    %7 = arith.maximumf %5, %6 : vector<64x128xf32>
    %c0_6 = arith.constant 0 : index
    %c0_7 = arith.constant 0 : index
    %8 = vector.load %arg4[%c0_6, %c0_7] : memref<32x64xf32, #tpu.memory_space<vmem>>, vector<32x64xf32>
    %cst_8 = arith.constant dense<0.000000e+00> : vector<32x128xf32>
    %9 = tpu.matmul %8, %7, %cst_8 {dimension_numbers = #tpu.dot_dimension_numbers<[1], [0], [0], [1], [0, 0, 1, 1], [], []>} : vector<32x64xf32>, vector<64x128xf32>, vector<32x128xf32> -> vector<32x128xf32>
    %c0_9 = arith.constant 0 : index
    %c0_10 = arith.constant 0 : index
    %10 = vector.load %arg5[%c0_9, %c0_10] : memref<32x1xf32, #tpu.memory_space<vmem>>, vector<32x1xf32>
    %11 = vector.broadcast %10 : vector<32x1xf32> to vector<32x128xf32>
    %12 = arith.addf %9, %11 : vector<32x128xf32>
    %cst_11 = arith.constant 0.000000e+00 : f32
    %13 = vector.broadcast %cst_11 : f32 to vector<32x128xf32>
    %14 = arith.maximumf %12, %13 : vector<32x128xf32>
    %c0_12 = arith.constant 0 : index
    %c0_13 = arith.constant 0 : index
    %15 = vector.load %arg6[%c0_12, %c0_13] : memref<32x1xf32, #tpu.memory_space<vmem>>, vector<32x1xf32>
    %16 = vector.broadcast %15 : vector<32x1xf32> to vector<32x128xf32>
    %17 = arith.mulf %16, %14 : vector<32x128xf32>
    %cst_14 = arith.constant dense<0.000000e+00> : vector<128xf32>
    %18 = vector.multi_reduction <add>, %17, %cst_14 [0] : vector<32x128xf32> to vector<128xf32>
    %19 = vector.shape_cast %18 : vector<128xf32> to vector<1x128xf32>
    %c0_15 = arith.constant 0 : index
    %c0_16 = arith.constant 0 : index
    %20 = memref.load %arg7[%c0_15, %c0_16] : memref<1x1xf32, #tpu.memory_space<smem>>
    %21 = vector.broadcast %20 : f32 to vector<1x128xf32>
    %22 = arith.addf %19, %21 : vector<1x128xf32>
    %c0_17 = arith.constant 0 : index
    %c0_18 = arith.constant 0 : index
    %23 = vector.load %arg8[%c0_17, %c0_18] : memref<1x128xf32, #tpu.memory_space<vmem>>, vector<1x128xf32>
    tpu.vector_store %arg8[%c0_17, %c0_18], %22 {strides = array<i32>} : memref<1x128xf32, #tpu.memory_space<vmem>>, vector<1x128xf32>,
    return
  }
  func.func @transform_0(%arg0: i32) -> (i32, i32) {
    %c0_i32 = arith.constant 0 : i32
    %c0_i32_0 = arith.constant 0 : i32
    return %arg0, %c0_i32 : i32, i32
  }
  func.func @transform_1(%arg0: i32) -> (i32, i32) {
    %c0_i32 = arith.constant 0 : i32
    %c0_i32_0 = arith.constant 0 : i32
    %c0_i32_1 = arith.constant 0 : i32
    return %c0_i32, %c0_i32_0 : i32, i32
  }
  func.func @transform_2(%arg0: i32) -> (i32, i32) {
    %c0_i32 = arith.constant 0 : i32
    %c0_i32_0 = arith.constant 0 : i32
    %c0_i32_1 = arith.constant 0 : i32
    return %c0_i32, %c0_i32_0 : i32, i32
  }
  func.func @transform_3(%arg0: i32) -> (i32, i32) {
    %c0_i32 = arith.constant 0 : i32
    %c0_i32_0 = arith.constant 0 : i32
    %c0_i32_1 = arith.constant 0 : i32
    return %c0_i32, %c0_i32_0 : i32, i32
  }
  func.func @transform_4(%arg0: i32) -> (i32, i32) {
    %c0_i32 = arith.constant 0 : i32
    %c0_i32_0 = arith.constant 0 : i32
    %c0_i32_1 = arith.constant 0 : i32
    return %c0_i32, %c0_i32_0 : i32, i32
  }
  func.func @transform_5(%arg0: i32) -> (i32, i32) {
    %c0_i32 = arith.constant 0 : i32
    %c0_i32_0 = arith.constant 0 : i32
    %c0_i32_1 = arith.constant 0 : i32
    return %c0_i32, %c0_i32_0 : i32, i32
  }
  func.func @transform_6(%arg0: i32) -> (i32, i32) {
    %c0_i32 = arith.constant 0 : i32
    %c0_i32_0 = arith.constant 0 : i32
    %c0_i32_1 = arith.constant 0 : i32
    return %c0_i32, %c0_i32_0 : i32, i32
  }
  func.func @transform_7(%arg0: i32) -> (i32, i32) {
    %c0_i32 = arith.constant 0 : i32
    %c0_i32_0 = arith.constant 0 : i32
    return %c0_i32, %arg0 : i32, i32
  }
}

</mosaic_0001>

<bundles_post_ra>
// kernel: tpu_custom_call.1
= control target key start
LH: loop header
LB: loop body
LE: loop exit
PB: predicated region body
PF: predicated region fallthrough
CT: control target
= control target key end

     0   :  { %s1296_s0 = inlined_call_operand.vmem [shape: f32[256,16], index: 0, kind: input, shape index: {}]   ;;  %s1297_s1 = inlined_call_operand.vmem [shape: f32[64,16], index: 1, kind: input, shape index: {}]   ;;  %s1298_s2 = inlined_call_operand.vmem [shape: f32[64,1], index: 2, kind: input, shape index: {}]   ;;  %s1299_s3 = inlined_call_operand.vmem [shape: f32[32,64], index: 3, kind: input, shape index: {}]   ;;  %s1300_s4 = inlined_call_operand.vmem [shape: f32[32,1], index: 4, kind: input, shape index: {}]   ;;  %s1301_s5 = inlined_call_operand.vmem [shape: f32[32,1], index: 5, kind: input, shape index: {}]   ;;  %s1302_s6 = inlined_call_operand.<no memory space> [shape: f32[1,1], index: 6, kind: input, shape index: {}]   ;;  %s1303_s7 = inlined_call_operand.hbm [shape: f32[1,256], index: 7, kind: output, shape index: {}]  }
   0x1   :  { %12 = sst [smem:[#allocation2]] %s1302_s6 }
   0x2   :  { %13 = vsyncpa [#allocation4], 0 }
   0x3   :  { %15 = vsyncpa [#allocation4 + $0x1], 0  ;;  %s1064_s26 = smov 0   ;;  %s1066_s27 = smov 0  }
   0x4   :  { %s1068_s28 = smov 0   ;;  %s1070_s29 = smov 0  }
   0x5 LB: > { %s775_s6 = sadd.s32 4294967295, %s1017_s29   ;;  %s776_s30 = sadd.s32 4294967294, %s1017_s29   ;;  %s1017_s29 = sphi %s1070_s29, %s1309_s29   ;;  %s1013_s28 = sphi %s1068_s28, %s1308_s28   ;;  %s1009_s27 = sphi %s1066_s27, %s1307_s27   ;;  %s1005_s26 = sphi %s1064_s26, %s1306_s26  }
   0x6   : > { %s1087_s8 = sadd.s32 1, %s1017_s29   ;;  %s180_s9 = sadd.s32 1, %s1013_s28 }
   0x7   : > { %s177_s10 = ssub.s32 %s1017_s29, %s1087_s8  ;;  %p190_p0 = scmp.ne.s32.totalorder %s1013_s28, %s1009_s27 }
   0x8   : > { %p178_p1 = scmp.eq.s32.totalorder %s177_s10, 0  ;;  %p191_p2 = scmp.eq.s32.totalorder %s775_s6, 1 }
   0x9   : > { %p196_p3 = scmp.ne.s32.totalorder %s1009_s27, %s1005_s26  ;;  %p197_p4 = scmp.eq.s32.totalorder %s776_s30, 1 }
   0xa   : > { %s1097_s11 = scalar_select %p178_p1, %s1013_s28, %s180_s9  }
   0xb   : > { %p1099_p5 = por %p191_p2, %p190_p0  ;;  %p1103_p6 = por %p197_p4, %p196_p3 }
   0xc   : > { %p779_p7 = scmp.ge.s32.totalorder %s1017_s29, 1  ;;  %p242_p8 = scmp.lt.s32.totalorder %s1017_s29, 3 }
   0xe   : > { %p243_p9 = pnand %p779_p7, %p242_p8 }
   0xf   : > { %s1109_s14 = sshll.u32 (!%p243_p9), %s775_s6, 4  ;;  %s704_s17 = sld [smem:[#allocation2]] (!%p243_p9) }
  0x10   : > { %246 = sbr.rel (%p243_p9) target bundleno = 551 (0x227), region = 48  ;;  %p274_p10 = scmp.lt.s32.totalorder (!%p243_p9), %s1109_s14, 31 }
  0x11   : > { %s271_s18 = sand.u32 (!%p243_p9), 1, %s1009_s27   ;;  %s719_s23 = scalar_lea.hbm (!%p243_p9), %s1303_s7, %s1109_s14 }
  0x12   : > { %s1020_s6 = smov (!%p243_p9), [#allocation3]  }
  0x13   : > { %s961_s30 = sshll.u32 (!%p243_p9), %s1020_s6, 4  ;;  %s962_s30 = int_to_ptr.vmem [resolvable:$false] %s961_s30 }
  0x14   : > { %s963_s9 = scalar_lea.vmem (!%p243_p9), %s962_s30, 32 }
  0x15   : > { %vm351_vm0 = vcmask 130048   ;;  %v295_v0 = vld [vmem:[%s1297_s1] sm:$0xff]  ;;  %v1019_v1 = vmov 0   ;;  %v310_v2 = vld [vmem:[%s1298_s2 + $0x38] sm:$0xff]  ;;  %s275_s19 = scalar_select %p274_p10, %s1109_s14, 31  ;;  %v308_v3 = vld [vmem:[%s1298_s2 + $0x28] sm:$0xff] }
  0x16   : > { %881 = vmatprep.mubr.msk.f32.mxu0 %vm351_vm0, %v295_v0  ;;  %955 = vset.pattern.permute.xlu0 %v1019_v1  ;;  %v309_v4 = vld [vmem:[%s1298_s2 + $0x30] sm:$0xff]  ;;  %v307_v5 = vld [vmem:[%s1298_s2 + $0x20] sm:$0xff]  ;;  %v306_v8 = vld [vmem:[%s1298_s2 + $0x18] sm:$0xff]  ;;  %vm565_vm1 = vcmask 523264  }
  0x17   : > { %956 = vset.pattern.permute.xlu1 %v1019_v1  ;;  %348 = vperm.xlu0 %955, %v310_v2   ;;  %s781_s24 = sshll.u32 %s275_s19, 3  ;;  %v305_v9 = vld [vmem:[%s1298_s2 + $0x10] sm:$0xff]  ;;  %v304_v11 = vld [vmem:[%s1298_s2 + $0x8] sm:$0xff]  ;;  %v303_v12 = vld [vmem:[%s1298_s2] sm:$0xff]  ;;  %s272_s19 = scalar_lea.vmem [#allocation3], %s271_s18 }
  0x18   : > { %338 = vperm.xlu1 %956, %v308_v3   ;;  %s1132_s10 = scalar_lea.vmem %s1296_s0, %s781_s24  ;;  %v541_v14 = vld [vmem:[%s1300_s4] sm:$0xff]  ;;  %v542_v15 = vld [vmem:[%s1300_s4 + $0x8] sm:$0xff]  ;;  %v543_v17 = vld [vmem:[%s1300_s4 + $0x10] sm:$0xff]  ;;  %s721_s20 = sshll.u32 %s272_s19, 4  ;;  %s722_s20 = int_to_ptr.vmem [resolvable:$true] %s721_s20 }
  0x19   : > { %v294_v6 = vld [vmem:[%s1132_s10 + $0x78] sm:$0xff]  ;;  %v293_v7 = vld [vmem:[%s1132_s10 + $0x70] sm:$0xff]  ;;  %v292_v10 = vld [vmem:[%s1132_s10 + $0x68] sm:$0xff]  ;;  %s709_s24 = scalar_lea.sflag [#allocation4], %s271_s18  ;;  %s957_s25 = scalar_lea.vmem %s722_s20, 16 }
  0x1a   : > { %849 = vmatprep.subr.msk.mxu0 %vm351_vm0, %v294_v6  ;;  %v291_v13 = vld [vmem:[%s1132_s10 + $0x60] sm:$0xff]  ;;  %v290_v16 = vld [vmem:[%s1132_s10 + $0x58] sm:$0xff]  ;;  %v289_v19 = vld [vmem:[%s1132_s10 + $0x50] sm:$0xff]  ;;  %p958_p11 = scmp.ne.s32.totalorder %s722_s20, %s957_s25  ;;  %p964_p0 = scmp.lt.s32.totalorder %s722_s20, %s962_s30 }
  0x1b   : > { %343 = vperm.xlu0 %955, %v309_v4   ;;  %850 = vmatpush3.xpose.msk.msra.mxu0 %vm351_vm0, %v294_v6  ;;  %v544_v18 = vld [vmem:[%s1300_s4 + $0x18] sm:$0xff]  ;;  %v667_v20 = vld [vmem:[%s1301_s5] sm:$0xff]  ;;  %v668_v21 = vld [vmem:[%s1301_s5 + $0x8] sm:$0xff]  ;;  %p965_p1 = scmp.lt.s32.totalorder %s963_s9, %s957_s25 }
  0x1c   : > { %333 = vperm.xlu1 %956, %v307_v5   ;;  %851 = vmatprep.subr.msk.mxu0 %vm351_vm0, %v293_v7  ;;  %v288_v22 = vld [vmem:[%s1132_s10 + $0x48] sm:$0xff]  ;;  %v669_v23 = vld [vmem:[%s1301_s5 + $0x10] sm:$0xff]  ;;  %v670_v24 = vld [vmem:[%s1301_s5 + $0x18] sm:$0xff]  ;;  %p959_p12 = pnand %p958_p11, %p1099_p5 }
  0x1d   : > { %v287_v25 = vld [vmem:[%s1132_s10 + $0x40] sm:$0xff]  ;;  %v286_v26 = vld [vmem:[%s1132_s10 + $0x38] sm:$0xff]  ;;  %v285_v27 = vld [vmem:[%s1132_s10 + $0x30] sm:$0xff]  ;;  %p966_p2 = por %p965_p1, %p964_p0 }
  0x1e   : > { %v284_v28 = vld [vmem:[%s1132_s10 + $0x28] sm:$0xff]  ;;  %v283_v29 = vld [vmem:[%s1132_s10 + $0x20] sm:$0xff]  ;;  %v282_v30 = vld [vmem:[%s1132_s10 + $0x18] sm:$0xff]  ;;  %p960_p13 = pneg %p959_p12 }
  0x1f   : > { %328 = vperm.xlu0 %955, %v306_v8   ;;  %852 = vmatpush3.xpose.msk.msra.mxu0 %vm351_vm0, %v293_v7  ;;  %v281_v31 = vld [vmem:[%s1132_s10 + $0x10] sm:$0xff]  ;;  %v280_v32 = vld [vmem:[%s1132_s10 + $0x8] sm:$0xff]  ;;  %v279_v33 = vld [vmem:[%s1132_s10] sm:$0xff] }
  0x20   : > { %323 = vperm.xlu1 %956, %v305_v9   ;;  %853 = vmatprep.subr.msk.mxu0 %vm351_vm0, %v292_v10  ;;  %v296_v34 = vld [vmem:[%s1297_s1 + $0x8] sm:$0xff]  ;;  %v297_v35 = vld [vmem:[%s1297_s1 + $0x10] sm:$0xff]  ;;  %v298_v36 = vld [vmem:[%s1297_s1 + $0x18] sm:$0xff]  ;;  %p967_p3 = pnand %p966_p2, %p960_p13 }
  0x21   : > { %v299_v37 = vld [vmem:[%s1297_s1 + $0x20] sm:$0xff]  ;;  %v300_v38 = vld [vmem:[%s1297_s1 + $0x28] sm:$0xff]  ;;  %v301_v39 = vld [vmem:[%s1297_s1 + $0x30] sm:$0xff] }
  0x22   : > { %v302_v40 = vld [vmem:[%s1297_s1 + $0x38] sm:$0xff]  ;;  %v537_v41 = vld [vmem:[%s1299_s3] sm:$0xff] }
  0x23   : > { %318 = vperm.xlu0 %955, %v304_v11   ;;  %854 = vmatpush3.xpose.msk.msra.mxu0 %vm351_vm0, %v292_v10  ;;  %v538_v10 = vld [vmem:[%s1299_s3 + $0x8] sm:$0xff]  ;;  %v539_v11 = vld [vmem:[%s1299_s3 + $0x10] sm:$0xff] }
  0x24   : > { %313 = vperm.xlu1 %956, %v303_v12   ;;  %855 = vmatprep.subr.msk.mxu0 %vm351_vm0, %v291_v13  ;;  %v540_v12 = vld [vmem:[%s1299_s3 + $0x18] sm:$0xff] }
  0x25   : > { %909 = vmatprep.mubr.msk.f32.mxu1 %vm565_vm1, %v537_v41 }
  0x27   : > { %547 = vperm.xlu0 %955, %v541_v14   ;;  %856 = vmatpush3.xpose.msk.msra.mxu0 %vm351_vm0, %v291_v13 }
  0x28   : > { %552 = vperm.xlu1 %956, %v542_v15   ;;  %857 = vmatprep.subr.msk.mxu0 %vm351_vm0, %v290_v16 }
  0x2b   : > { %557 = vperm.xlu0 %955, %v543_v17   ;;  %858 = vmatpush3.xpose.msk.msra.mxu0 %vm351_vm0, %v290_v16 }
  0x2c   : > { %562 = vperm.xlu1 %956, %v544_v18   ;;  %859 = vmatprep.subr.msk.mxu0 %vm351_vm0, %v289_v19 }
  0x2f   : > { %673 = vperm.xlu0 %955, %v667_v20   ;;  %860 = vmatpush3.xpose.msk.msra.mxu0 %vm351_vm0, %v289_v19 }
  0x30   : > { %678 = vperm.xlu1 %956, %v668_v21   ;;  %861 = vmatprep.subr.msk.mxu0 %vm351_vm0, %v288_v22 }
  0x33   : > { %683 = vperm.xlu0 %955, %v669_v23   ;;  %862 = vmatpush3.xpose.msk.msra.mxu0 %vm351_vm0, %v288_v22 }
  0x34   : > { %688 = vperm.xlu1 %956, %v670_v24   ;;  %863 = vmatprep.subr.msk.mxu0 %vm351_vm0, %v287_v25 }
  0x37   : > { %864 = vmatpush3.xpose.msk.msra.mxu0 %vm351_vm0, %v287_v25 }
  0x38   : > { %865 = vmatprep.subr.msk.mxu0 %vm351_vm0, %v286_v26 }
  0x3b   : > { %866 = vmatpush3.xpose.msk.msra.mxu0 %vm351_vm0, %v286_v26 }
  0x3c   : > { %867 = vmatprep.subr.msk.mxu0 %vm351_vm0, %v285_v27 }
  0x3f   : > { %868 = vmatpush3.xpose.msk.msra.mxu0 %vm351_vm0, %v285_v27 }
  0x40   : > { %869 = vmatprep.subr.msk.mxu0 %vm351_vm0, %v284_v28 }
  0x43   : > { %870 = vmatpush3.xpose.msk.msra.mxu0 %vm351_vm0, %v284_v28 }
  0x44   : > { %871 = vmatprep.subr.msk.mxu0 %vm351_vm0, %v283_v29 }
  0x47   : > { %872 = vmatpush3.xpose.msk.msra.mxu0 %vm351_vm0, %v283_v29 }
  0x48   : > { %873 = vmatprep.subr.msk.mxu0 %vm351_vm0, %v282_v30 }
  0x4b   : > { %874 = vmatpush3.xpose.msk.msra.mxu0 %vm351_vm0, %v282_v30 }
  0x4c   : > { %875 = vmatprep.subr.msk.mxu0 %vm351_vm0, %v281_v31 }
  0x4f   : > { %876 = vmatpush3.xpose.msk.msra.mxu0 %vm351_vm0, %v281_v31 }
  0x50   : > { %877 = vmatprep.subr.msk.mxu0 %vm351_vm0, %v280_v32 }
  0x53   : > { %878 = vmatpush3.xpose.msk.msra.mxu0 %vm351_vm0, %v280_v32 }
  0x54   : > { %879 = vmatprep.subr.msk.mxu0 %vm351_vm0, %v279_v33 }
  0x57   : > { %880 = vmatpush3.xpose.msk.msra.mxu0 %vm351_vm0, %v279_v33 }
  0x5a   : > { %882 = vmatmul.mubr.msk.f32.vlgmr.msra.gmra.mxu0 %vm351_vm0, %v296_v34 }
  0x5b   : > { %884 = vmatprep.mubr.msk.f32.mxu0 %vm351_vm0, %v297_v35 }
  0x5e   : > { %885 = vmatmul.mubr.msk.f32.gmra.mxu0 %vm351_vm0, %v298_v36 }
  0x5f   : > { %887 = vmatprep.mubr.msk.f32.mxu0 %vm351_vm0, %v299_v37 }
  0x62   : > { %888 = vmatmul.mubr.msk.f32.gmra.mxu0 %vm351_vm0, %v300_v38 }
  0x63   : > { %890 = vmatprep.mubr.msk.f32.mxu0 %vm351_vm0, %v301_v39 }
  0x66   : > { %891 = vmatmul.mubr.msk.f32.gmra.mxu0 %vm351_vm0, %v302_v40 }
  0x92   : > { %v349_v44 = vpop.permute.xlu0 %348 }
  0x93   : > { %v339_v46 = vpop.permute.xlu1 %338 }
  0x96   : > { %v344_v49 = vpop.permute.xlu0 %343 }
  0x97   : > { %v334_v51 = vpop.permute.xlu1 %333 }
  0x9a   : > { %v329_v58 = vpop.permute.xlu0 %328 }
  0x9b   : > { %v324_v61 = vpop.permute.xlu1 %323 }
  0x9e   : > { %v319_v2 = vpop.permute.xlu0 %318 }
  0x9f   : > { %v314_v5 = vpop.permute.xlu1 %313 }
  0xa2   : > { %v548_v13 = vpop.permute.xlu0 %547 }
  0xa3   : > { %v553_v14 = vpop.permute.xlu1 %552 }
  0xa6   : > { %v558_v15 = vpop.permute.xlu0 %557 }
  0xa7   : > { %v563_v16 = vpop.permute.xlu1 %562 }
  0xaa   : > { %v674_v21 = vpop.permute.xlu0 %673 }
  0xab   : > { %v679_v26 = vpop.permute.xlu1 %678 }
  0xae   : > { %v684_v33 = vpop.permute.xlu0 %683 }
  0xaf   : > { %v689_v36 = vpop.permute.xlu1 %688 }
 0x11a   : > { %v883_v42 = vpop.f32.mrf.mxu0 }
 0x11b   : > { %v496_v3 = vadd.f32 %v883_v42, %v319_v2 }
 0x11c   : > { %v490_v43 = vpop.f32.mrf.mxu0 }
 0x11d   : > { %v491_v6 = vadd.f32 %v490_v43, %v314_v5  ;;  %v530_v8 = vmax.f32 %v496_v3, 0.0 }
 0x11e   : > { %v886_v45 = vpop.f32.mrf.mxu0 }
 0x11f   : > { %v506_v62 = vadd.f32 %v886_v45, %v329_v58  ;;  %v529_v9 = vmax.f32 %v491_v6, 0.0  ;;  %v705_v45 = vstv %s704_s17 }
 0x120   : > { %v500_v47 = vpop.f32.mrf.mxu0 }
 0x121   : > { %v501_v0 = vadd.f32 %v500_v47, %v324_v61  ;;  %v532_v4 = vmax.f32 %v506_v62, 0.0 }
 0x122   : > { %v889_v48 = vpop.f32.mrf.mxu0 }
 0x123   : > { %v516_v55 = vadd.f32 %v889_v48, %v339_v46  ;;  %v531_v7 = vmax.f32 %v501_v0, 0.0 }
 0x124   : > { %v510_v50 = vpop.f32.mrf.mxu0 }
 0x125   : > { %v511_v59 = vadd.f32 %v510_v50, %v334_v51  ;;  %v534_v63 = vmax.f32 %v516_v55, 0.0 }
 0x126   : > { %v892_v52 = vpop.f32.mrf.mxu0 }
 0x127   : > { %v526_v53 = vadd.f32 %v892_v52, %v349_v44  ;;  %v533_v1 = vmax.f32 %v511_v59, 0.0 }
 0x128   : > { %v520_v54 = vpop.f32.mrf.mxu0 }
 0x129   : > { %v536_v56 = vmax.f32 %v526_v53, 0.0  ;;  %v521_v57 = vadd.f32 %v520_v54, %v344_v49 }
 0x12b   : > { %v535_v60 = vmax.f32 %v521_v57, 0.0  ;;  %893 = vmatprep.subr.mxu1 %v536_v56 }
 0x12c   : > { %894 = vmatpush3.msra.mxu1 %v536_v56 }
 0x12d   : > { %895 = vmatprep.subr.mxu1 %v535_v60 }
 0x12e   : > { %896 = vmatpush3.msra.mxu1 %v535_v60 }
 0x12f   : > { %897 = vmatprep.subr.mxu1 %v534_v63 }
 0x130   : > { %898 = vmatpush3.msra.mxu1 %v534_v63 }
 0x131   : > { %899 = vmatprep.subr.mxu1 %v533_v1 }
 0x132   : > { %900 = vmatpush3.msra.mxu1 %v533_v1 }
 0x133   : > { %901 = vmatprep.subr.mxu1 %v532_v4 }
 0x134   : > { %902 = vmatpush3.msra.mxu1 %v532_v4 }
 0x135   : > { %903 = vmatprep.subr.mxu1 %v531_v7 }
 0x136   : > { %904 = vmatpush3.msra.mxu1 %v531_v7 }
 0x137   : > { %905 = vmatprep.subr.mxu1 %v530_v8 }
 0x138   : > { %906 = vmatpush3.msra.mxu1 %v530_v8 }
 0x139   : > { %907 = vmatprep.subr.mxu1 %v529_v9 }
 0x13a   : > { %908 = vmatpush3.msra.mxu1 %v529_v9 }
 0x13b   : > { %910 = vmatmul.mubr.msk.f32.vlgmr.msra.gmra.mxu1 %vm565_vm1, %v538_v10 }
 0x13c   : > { %912 = vmatprep.mubr.msk.f32.mxu1 %vm565_vm1, %v539_v11 }
 0x13f   : > { %913 = vmatmul.mubr.msk.f32.gmra.mxu1 %vm565_vm1, %v540_v12 }
 0x1fb   : > { %v911_v17 = vpop.f32.mrf.mxu1 }
 0x1fc   : > { %v650_v18 = vadd.f32 %v911_v17, %v553_v14 }
 0x1fd   : > { %v644_v19 = vpop.f32.mrf.mxu1 }
 0x1fe   : > { %v645_v20 = vadd.f32 %v644_v19, %v548_v13  ;;  %v664_v23 = vmax.f32 %v650_v18, 0.0 }
 0x1ff   : > { %v914_v22 = vpop.f32.mrf.mxu1 }
 0x200   : > { %v663_v24 = vmax.f32 %v645_v20, 0.0  ;;  %v660_v25 = vadd.f32 %v914_v22, %v563_v16  ;;  %v692_v30 = vmul.f32 %v679_v26, %v664_v23 }
 0x201   : > { %v654_v27 = vpop.f32.mrf.mxu1 }
 0x202   : > { %v691_v28 = vmul.f32 %v674_v21, %v663_v24  ;;  %v655_v29 = vadd.f32 %v654_v27, %v558_v15  ;;  %v666_v31 = vmax.f32 %v660_v25, 0.0 }
 0x204   : > { %v665_v32 = vmax.f32 %v655_v29, 0.0  ;;  %v695_v34 = vadd.f32 %v692_v30, %v691_v28  ;;  %v694_v37 = vmul.f32 %v689_v36, %v666_v31 }
 0x206   : > { %v693_v35 = vmul.f32 %v684_v33, %v665_v32 }
 0x208   : > { %v696_v38 = vadd.f32 %v695_v34, %v693_v35 }
 0x20a   : > { %v697_v39 = vadd.f32 %v696_v38, %v694_v37 }
 0x20c   : > { %v698_v40 = vrot.slane %v697_v39, 4 }
 0x20e   : > { %v699_v41 = vadd.f32 %v698_v40, %v697_v39 }
 0x210   : > { %v700_v42 = vrot.slane %v699_v41, 2 }
 0x212   : > { %v701_v43 = vadd.f32 %v700_v42, %v699_v41 }
 0x214   : > { %v702_v44 = vrot.slane %v701_v43, 1 }
 0x216   : > { %v703_v46 = vadd.f32 %v702_v44, %v701_v43 }
 0x218   : > { %v706_v47 = vadd.f32 %v705_v45, %v703_v46 }
 0x21a   : > { %707 = vst [vmem:[%s272_s19] sm:$0x1] %v706_v47 }
 0x21b   : > { %970 = shalt.err (!%p967_p3)
}
 0x21c   : > { %s971_s15 = scalar_lea.hbm %s719_s23, 16  ;;  %s975_s16 = scalar_lea.hbm %s1303_s7, 32 }
 0x21d   : > { %p972_p4 = scmp.ne.s32.totalorder %s719_s23, %s971_s15  ;;  %p976_p9 = scmp.lt.s32.totalorder %s719_s23, %s1303_s7 }
 0x21e   : > { %p977_p10 = scmp.lt.s32.totalorder %s975_s16, %s971_s15 }
 0x21f   : > { %p973_p7 = pnand %p972_p4, %p1099_p5 }
 0x220   : > { %p978_p11 = por %p977_p10, %p976_p9 }
 0x221   : > { %p974_p8 = pneg %p973_p7 }
 0x223   : > { %p979_p12 = pnand %p978_p11, %p974_p8 }
 0x225   : > { %982 = shalt.err (!%p979_p12)
}
 0x226   : > { %915 = dma.vmem_to_hbm [thread:$0]  (%p1099_p5), %s722_s20, 16, %s719_s23, %s709_s24  }
 0x227 PF: > { %p921_p13 = scmp.ge.s32.totalorder %s1017_s29, 2  ;;  %s733_s19 = sand.u32 1, %s1005_s26  }
 0x228   : > { %s734_s21 = scalar_lea.sflag [#allocation4], %s733_s19 }
 0x229   : > { %p918_p0 = pnand %p921_p13, %p1103_p6 }
 0x22b   : > { %p919_p1 = pneg %p918_p0 }
 0x22d   : > { %1000 = dma.done.wait (%p919_p1), %s734_s21, 16  }
 0x22e   : > { %1002 = vsyncadd (%p919_p1), %s734_s21, 4294967280  ;;  %p18_p2 = scmp.ge.s32.totalorder %s1087_s8, 4   ;;  %s1306_s26 = smov %s1009_s27 }
 0x22f   : > { %s1307_s27 = smov %s1013_s28  ;;  %s1308_s28 = smov %s1097_s11 }
 0x230   : > { %s1309_s29 = smov %s1087_s8  ;;  %20 = sbr.rel (!%p18_p2) target bundleno = 5 (0x5), region = 83 }
 0x235   :  { %738 = vsyncpa [#allocation4], 1 }
 0x236   :  { %740 = vsyncpa [#allocation4 + $0x1], 1 }

</bundles_post_ra>
